<compile_context>
chip_gen: v7x
topology: tpu7x:2x2x1
jax: 0.10.0
libtpu: 0.0.40
codegen_flags: <defaults>
</compile_context>

<pallas_src>
import functools

import jax
import jax.numpy as jnp
from jax import lax
from jax.experimental import pallas as pl
from jax.experimental.pallas import tpu as pltpu


def _dsnt3d_kernel(hm_ref, out_ref, *, act, height, width, depth, tb, tc):
    """Partial DSNT3d for one (TB, TC, H, W) block of heatmap logits.

    hm_ref:  (TB, TC, H, W) heatmap logits (native dtype, cast in-kernel)
    out_ref: (TB, 3, W) accumulator, resident across the channel-tile grid
             axis; rows are (x, y, z).  Summed over all channel tiles it is
             the full DSNT output for these batch elements.
    """
    c_step = pl.program_id(1)

    @pl.when(c_step == 0)
    def _():
        out_ref[...] = jnp.zeros_like(out_ref)

    # f32 compute on all generations; cast fused into the single big pass.
    hm = hm_ref[...].reshape(tb * tc, height, width).astype(jnp.float32)

    # ---- activation (per channel; fully contained in this tile) -----------
    if act == "softmax":
        m = jnp.max(jnp.max(hm, axis=2, keepdims=True), axis=1, keepdims=True)
        heat = jnp.exp(hm - m)                       # EUP
    elif act == "sigmoid":
        heat = 1.0 / (1.0 + jnp.exp(-hm))            # EUP exp
    else:                                            # 'identity'
        heat = hm

    # ---- single full-tensor pass: plain + xs-weighted H (sublane) sums ----
    # xs varies along the heatmap's H axis: xs[q] = (q + .5) / width
    q = lax.broadcasted_iota(jnp.int32, (height, 1), 0).astype(jnp.float32)
    xs = ((q + 0.5) * (1.0 / width))[None]           # (1, H, 1)

    s_h = jnp.sum(heat, axis=1)                      # (N, W), N = TB*TC
    wx = jnp.sum(heat * xs, axis=1)                  # (N, W)

    # per-(b, c) normalizer: exact reciprocal, one per channel
    denom = jnp.sum(s_h, axis=1, keepdims=True)      # (N, 1)
    inv = pl.reciprocal(denom, approx=False)         # (N, 1)

    # Split N back into (TB, TC).  _choose_tiles guarantees TB == 1 or
    # TC % 8 == 0, so this reshape is trivial / sublane-tile aligned.
    ps_h = (s_h * inv).reshape(tb, tc, width)        # (TB, TC, W) prob col-sums
    wxn = (wx * inv).reshape(tb, tc, width)          # (TB, TC, W) x-weighted

    # y varies along the (global) channel axis, z along the W axis.
    p = lax.broadcasted_iota(jnp.int32, (tc, 1), 0) + c_step * tc
    ys = ((p.astype(jnp.float32) + 0.5) * (1.0 / height))[None]   # (1, TC, 1)
    r = lax.broadcasted_iota(jnp.int32, (1, width), 1).astype(jnp.float32)
    zs = ((r + 0.5) * (1.0 / depth))[None]                        # (1, 1, W)

    out_x = jnp.sum(wxn, axis=1, keepdims=True)           # (TB, 1, W)
    out_y = jnp.sum(ps_h * ys, axis=1, keepdims=True)     # (TB, 1, W)
    out_z = jnp.sum(ps_h, axis=1, keepdims=True) * zs     # (TB, 1, W)

    # direct row accumulates into the resident output block (no concat relayout)
    out_ref[:, 0:1, :] += out_x
    out_ref[:, 1:2, :] += out_y
    out_ref[:, 2:3, :] += out_z


def _choose_tiles(B, C, H, W, block_budget_bytes):
    """Pick (TB, TC) so each grid step moves >= ~0.5-1 MiB while the
    double-buffered input block + f32 temporaries stay well under the
    smallest scoped-VMEM budget (v7x: 64 MiB physical)."""
    plane = H * W * 4                                   # f32 bytes per channel plane
    tc = max(1, min(C, block_budget_bytes // max(plane, 1)))
    while C % tc:
        tc -= 1
    tb = 1
    # Batch-block only when a whole element fits AND the in-kernel
    # (N, W) -> (TB, C, W) reshape stays sublane-tile aligned.
    if tc == C and C % 8 == 0:
        per_elem = plane * C
        tb = max(1, min(B, block_budget_bytes // max(per_elem, 1)))
        while B % tb:
            tb -= 1
    return tb, tc


def dsnt3d_forward(heatmap, depth, height, width, act="sigmoid",
                   block_budget_bytes=4 * 1024 * 1024):
    B, C, H, W = heatmap.shape
    assert (H, W) == (height, width)
    # The literal torch forward broadcast only type-checks when C == H == W == depth.
    assert C == H == W == depth, "literal DSNT3d.forward requires C == H == W == depth"
    assert act in ("sigmoid", "softmax", "identity")

    TB, TC = _choose_tiles(B, C, H, W, block_budget_bytes)

    in_block = TB * TC * H * W * heatmap.dtype.itemsize
    f32_block = TB * TC * H * W * 4
    vmem_limit = int(min(64 * 2**20,
                         max(32 * 2**20, 2 * in_block + 6 * f32_block + (2 << 20))))

    kernel = functools.partial(_dsnt3d_kernel, act=act, height=height,
                               width=width, depth=depth, tb=TB, tc=TC)

    out = pl.pallas_call(
        kernel,
        out_shape=jax.ShapeDtypeStruct((B, 3, W), jnp.float32),
        grid=(B // TB, C // TC),                     # channel (reduction) axis last
        in_specs=[pl.BlockSpec((TB, TC, H, W), lambda b, c: (b, c, 0, 0))],
        out_specs=pl.BlockSpec((TB, 3, W), lambda b, c: (b, 0, 0)),
        compiler_params=pltpu.CompilerParams(
            dimension_semantics=("parallel", "arbitrary"),
            vmem_limit_bytes=vmem_limit),
    )(heatmap)                                        # native dtype; cast in-kernel

    # Match the literal PyTorch output shape: (1, B, D(==W), 3)
    return jnp.transpose(out, (0, 2, 1))[None]


def create_normalized_meshgrid(depth, height, width, dtype=jnp.float32):
    """Same buffer as DSNT3d.create_normalized_meshgrid: shape (H, W, D, 3)."""
    zs = jnp.linspace(0.5 / depth, 1.0 - 0.5 / depth, depth, dtype=dtype)
    xs = jnp.linspace(0.5 / width, 1.0 - 0.5 / width, width, dtype=dtype)
    ys = jnp.linspace(0.5 / height, 1.0 - 0.5 / height, height, dtype=dtype)
    X, Y, Z = jnp.meshgrid(xs, ys, zs, indexing="xy")  # each (H, W, D), same as torch
    return jnp.stack([X, Y, Z], axis=-1)               # (H, W, D, 3)


def dsnt3d_reference(heatmap, depth, height, width, act="sigmoid"):
    """Pure-JAX transcription of the PyTorch forward (for the in-script check)."""
    grid = create_normalized_meshgrid(depth, height, width)
    if act == "softmax":
        B, C, H, W = heatmap.shape
        flat = heatmap.reshape(B, C, H * W)
        prob = jax.nn.softmax(flat, axis=-1).reshape(B, C, H, W)
    else:
        heat = 1.0 / (1.0 + jnp.exp(-heatmap)) if act == "sigmoid" else heatmap
        prob = heat / jnp.sum(heat, axis=(2, 3), keepdims=True)
    return jnp.sum(grid[None, None] * prob[..., None], axis=(2, 3))


if __name__ == "__main__":
    key = jax.random.PRNGKey(0)
    B, S = 2, 8                     # C == H == W == depth == S (literal-broadcast requirement)
    heatmap = jax.random.normal(key, (B, S, S, S), dtype=jnp.float32)

    # 1) all activations, default tiling (whole problem in one grid step)
    for act in ("sigmoid", "softmax", "identity"):
        out = jax.block_until_ready(dsnt3d_forward(heatmap, depth=S, height=S, width=S, act=act))
        ref = dsnt3d_reference(heatmap, depth=S, height=S, width=S, act=act)
        assert out.shape == ref.shape, (act, out.shape, ref.shape)
        err = float(jnp.max(jnp.abs(out - ref)))
        assert jnp.allclose(out, ref, rtol=1e-4, atol=1e-5), (act, err)

    # 2) force a tiny block budget to exercise the multi-step batch grid and
    #    the channel-tile reduction/accumulation path (grid = (2, 2) here)
    out = jax.block_until_ready(dsnt3d_forward(heatmap, depth=S, height=S, width=S,
                                               act="softmax", block_budget_bytes=1024))
    ref = dsnt3d_reference(heatmap, depth=S, height=S, width=S, act="softmax")
    err = float(jnp.max(jnp.abs(out - ref)))
    assert jnp.allclose(out, ref, rtol=1e-4, atol=1e-5), ("tiled", err)

    # 3) bf16 input: cast happens inside the kernel, compute stays f32
    hm_bf16 = heatmap.astype(jnp.bfloat16)
    out = jax.block_until_ready(dsnt3d_forward(hm_bf16, depth=S, height=S, width=S, act="sigmoid"))
    ref = dsnt3d_reference(hm_bf16.astype(jnp.float32), depth=S, height=S, width=S, act="sigmoid")
    err = float(jnp.max(jnp.abs(out - ref)))
    assert jnp.allclose(out, ref, rtol=1e-4, atol=1e-5), ("bf16", err)

    print("KERNEL_OK")
</pallas_src>

<mosaic_0001>
module attributes {stable_mosaic.version = 11 : i64} {
  func.func @_dsnt3d_kernel(%arg0: i32, %arg1: i32, %arg2: memref<2x8x8x8xf32, #tpu.memory_space<vmem>>, %arg3: memref<2x3x8xf32, #tpu.memory_space<vmem>>) attributes {dimension_semantics = [#tpu.dimension_semantics<parallel>, #tpu.dimension_semantics<arbitrary>], iteration_bounds = array<i64: 1, 1>, scalar_prefetch = 0 : i64, scratch_operands = 0 : i64, tpu.core_type = #tpu.core_type<tc>, window_params = [{transform_indices = @transform_0, window_bounds = array<i64: 2, 8, 8, 8>}, {transform_indices = @transform_1, window_bounds = array<i64: 2, 3, 8>}]} {
    %c0_i32 = arith.constant 0 : i32
    %0 = arith.cmpi eq, %arg1, %c0_i32 : i32
    %1 = arith.extui %0 : i1 to i32
    %c0_i32_0 = arith.constant 0 : i32
    %2 = arith.cmpi ne, %1, %c0_i32_0 : i32
    scf.if %2 {
      %cst_34 = arith.constant 0.000000e+00 : f32
      %68 = vector.broadcast %cst_34 : f32 to vector<2x3x8xf32>
      %c0_35 = arith.constant 0 : index
      %c0_36 = arith.constant 0 : index
      %c0_37 = arith.constant 0 : index
      %69 = vector.load %arg3[%c0_35, %c0_36, %c0_37] : memref<2x3x8xf32, #tpu.memory_space<vmem>>, vector<2x3x8xf32>
      tpu.vector_store %arg3[%c0_35, %c0_36, %c0_37], %68 {strides = array<i32>} : memref<2x3x8xf32, #tpu.memory_space<vmem>>, vector<2x3x8xf32>,
    } else {
    }
    %c0 = arith.constant 0 : index
    %c0_1 = arith.constant 0 : index
    %c0_2 = arith.constant 0 : index
    %c0_3 = arith.constant 0 : index
    %3 = vector.load %arg2[%c0, %c0_1, %c0_2, %c0_3] : memref<2x8x8x8xf32, #tpu.memory_space<vmem>>, vector<2x8x8x8xf32>
    %4 = vector.shape_cast %3 : vector<2x8x8x8xf32> to vector<16x8x8xf32>
    %cst = arith.constant 0.000000e+00 : f32
    %5 = vector.broadcast %cst : f32 to vector<16x8x8xf32>
    %6 = arith.subf %5, %4 : vector<16x8x8xf32>
    %7 = math.exp %6 : vector<16x8x8xf32>
    %cst_4 = arith.constant 1.000000e+00 : f32
    %8 = vector.broadcast %cst_4 : f32 to vector<16x8x8xf32>
    %9 = arith.addf %8, %7 : vector<16x8x8xf32>
    %cst_5 = arith.constant 1.000000e+00 : f32
    %10 = vector.broadcast %cst_5 : f32 to vector<16x8x8xf32>
    %11 = arith.divf %10, %9 : vector<16x8x8xf32>
    %12 = tpu.iota {dimensions = array<i32: 0>} : vector<8x1xi32>
    %13 = arith.sitofp %12 : vector<8x1xi32> to vector<8x1xf32>
    %cst_6 = arith.constant 5.000000e-01 : f32
    %14 = vector.broadcast %cst_6 : f32 to vector<8x1xf32>
    %15 = arith.addf %13, %14 : vector<8x1xf32>
    %cst_7 = arith.constant 1.250000e-01 : f32
    %16 = vector.broadcast %cst_7 : f32 to vector<8x1xf32>
    %17 = arith.mulf %15, %16 : vector<8x1xf32>
    %18 = vector.shape_cast %17 : vector<8x1xf32> to vector<1x8x1xf32>
    %cst_8 = arith.constant dense<0.000000e+00> : vector<16x8xf32>
    %19 = vector.multi_reduction <add>, %11, %cst_8 [1] : vector<16x8x8xf32> to vector<16x8xf32>
    %20 = vector.broadcast %18 : vector<1x8x1xf32> to vector<16x8x8xf32>
    %21 = arith.mulf %11, %20 : vector<16x8x8xf32>
    %cst_9 = arith.constant dense<0.000000e+00> : vector<16x8xf32>
    %22 = vector.multi_reduction <add>, %21, %cst_9 [1] : vector<16x8x8xf32> to vector<16x8xf32>
    %cst_10 = arith.constant dense<0.000000e+00> : vector<16xf32>
    %23 = vector.multi_reduction <add>, %19, %cst_10 [1] : vector<16x8xf32> to vector<16xf32>
    %24 = vector.shape_cast %23 : vector<16xf32> to vector<16x1xf32>
    %25 = tpu.reciprocal %24 : vector<16x1xf32> -> vector<16x1xf32>
    %26 = vector.broadcast %25 : vector<16x1xf32> to vector<16x8xf32>
    %27 = arith.mulf %19, %26 : vector<16x8xf32>
    %28 = vector.shape_cast %27 : vector<16x8xf32> to vector<2x8x8xf32>
    %29 = vector.broadcast %25 : vector<16x1xf32> to vector<16x8xf32>
    %30 = arith.mulf %22, %29 : vector<16x8xf32>
    %31 = vector.shape_cast %30 : vector<16x8xf32> to vector<2x8x8xf32>
    %32 = tpu.iota {dimensions = array<i32: 0>} : vector<8x1xi32>
    %c8_i32 = arith.constant 8 : i32
    %33 = arith.muli %arg1, %c8_i32 : i32
    %34 = vector.broadcast %33 : i32 to vector<8x1xi32>
    %35 = arith.addi %32, %34 : vector<8x1xi32>
    %36 = arith.sitofp %35 : vector<8x1xi32> to vector<8x1xf32>
    %cst_11 = arith.constant 5.000000e-01 : f32
    %37 = vector.broadcast %cst_11 : f32 to vector<8x1xf32>
    %38 = arith.addf %36, %37 : vector<8x1xf32>
    %cst_12 = arith.constant 1.250000e-01 : f32
    %39 = vector.broadcast %cst_12 : f32 to vector<8x1xf32>
    %40 = arith.mulf %38, %39 : vector<8x1xf32>
    %41 = vector.shape_cast %40 : vector<8x1xf32> to vector<1x8x1xf32>
    %42 = tpu.iota {dimensions = array<i32: 1>} : vector<1x8xi32>
    %43 = arith.sitofp %42 : vector<1x8xi32> to vector<1x8xf32>
    %cst_13 = arith.constant 5.000000e-01 : f32
    %44 = vector.broadcast %cst_13 : f32 to vector<1x8xf32>
    %45 = arith.addf %43, %44 : vector<1x8xf32>
    %cst_14 = arith.constant 1.250000e-01 : f32
    %46 = vector.broadcast %cst_14 : f32 to vector<1x8xf32>
    %47 = arith.mulf %45, %46 : vector<1x8xf32>
    %48 = vector.shape_cast %47 : vector<1x8xf32> to vector<1x1x8xf32>
    %cst_15 = arith.constant dense<0.000000e+00> : vector<2x8xf32>
    %49 = vector.multi_reduction <add>, %31, %cst_15 [1] : vector<2x8x8xf32> to vector<2x8xf32>
    %50 = vector.shape_cast %49 : vector<2x8xf32> to vector<2x1x8xf32>
    %51 = vector.broadcast %41 : vector<1x8x1xf32> to vector<2x8x8xf32>
    %52 = arith.mulf %28, %51 : vector<2x8x8xf32>
    %cst_16 = arith.constant dense<0.000000e+00> : vector<2x8xf32>
    %53 = vector.multi_reduction <add>, %52, %cst_16 [1] : vector<2x8x8xf32> to vector<2x8xf32>
    %54 = vector.shape_cast %53 : vector<2x8xf32> to vector<2x1x8xf32>
    %cst_17 = arith.constant dense<0.000000e+00> : vector<2x8xf32>
    %55 = vector.multi_reduction <add>, %28, %cst_17 [1] : vector<2x8x8xf32> to vector<2x8xf32>
    %56 = vector.shape_cast %55 : vector<2x8xf32> to vector<2x1x8xf32>
    %57 = vector.broadcast %48 : vector<1x1x8xf32> to vector<2x1x8xf32>
    %58 = arith.mulf %56, %57 : vector<2x1x8xf32>
    %c0_18 = arith.constant 0 : index
    %c0_19 = arith.constant 0 : index
    %c0_20 = arith.constant 0 : index
    %59 = vector.load %arg3[%c0_18, %c0_19, %c0_20] : memref<2x3x8xf32, #tpu.memory_space<vmem>>, vector<2x1x8xf32>
    %60 = arith.addf %59, %50 : vector<2x1x8xf32>
    %c0_21 = arith.constant 0 : index
    %c0_22 = arith.constant 0 : index
    %c0_23 = arith.constant 0 : index
    %61 = vector.load %arg3[%c0_21, %c0_22, %c0_23] : memref<2x3x8xf32, #tpu.memory_space<vmem>>, vector<2x1x8xf32>
    tpu.vector_store %arg3[%c0_21, %c0_22, %c0_23], %60 {strides = array<i32>} : memref<2x3x8xf32, #tpu.memory_space<vmem>>, vector<2x1x8xf32>,
    %c0_24 = arith.constant 0 : index
    %c1 = arith.constant 1 : index
    %c0_25 = arith.constant 0 : index
    %62 = vector.load %arg3[%c0_24, %c1, %c0_25] : memref<2x3x8xf32, #tpu.memory_space<vmem>>, vector<2x1x8xf32>
    %63 = arith.addf %62, %54 : vector<2x1x8xf32>
    %c0_26 = arith.constant 0 : index
    %c1_27 = arith.constant 1 : index
    %c0_28 = arith.constant 0 : index
    %64 = vector.load %arg3[%c0_26, %c1_27, %c0_28] : memref<2x3x8xf32, #tpu.memory_space<vmem>>, vector<2x1x8xf32>
    tpu.vector_store %arg3[%c0_26, %c1_27, %c0_28], %63 {strides = array<i32>} : memref<2x3x8xf32, #tpu.memory_space<vmem>>, vector<2x1x8xf32>,
    %c0_29 = arith.constant 0 : index
    %c2 = arith.constant 2 : index
    %c0_30 = arith.constant 0 : index
    %65 = vector.load %arg3[%c0_29, %c2, %c0_30] : memref<2x3x8xf32, #tpu.memory_space<vmem>>, vector<2x1x8xf32>
    %66 = arith.addf %65, %58 : vector<2x1x8xf32>
    %c0_31 = arith.constant 0 : index
    %c2_32 = arith.constant 2 : index
    %c0_33 = arith.constant 0 : index
    %67 = vector.load %arg3[%c0_31, %c2_32, %c0_33] : memref<2x3x8xf32, #tpu.memory_space<vmem>>, vector<2x1x8xf32>
    tpu.vector_store %arg3[%c0_31, %c2_32, %c0_33], %66 {strides = array<i32>} : memref<2x3x8xf32, #tpu.memory_space<vmem>>, vector<2x1x8xf32>,
    return
  }
  func.func @transform_0(%arg0: i32, %arg1: i32) -> (i32, i32, i32, i32) {
    %c0_i32 = arith.constant 0 : i32
    %c0_i32_0 = arith.constant 0 : i32
    %c0_i32_1 = arith.constant 0 : i32
    return %arg0, %arg1, %c0_i32, %c0_i32_0 : i32, i32, i32, i32
  }
  func.func @transform_1(%arg0: i32, %arg1: i32) -> (i32, i32, i32) {
    %c0_i32 = arith.constant 0 : i32
    %c0_i32_0 = arith.constant 0 : i32
    %c0_i32_1 = arith.constant 0 : i32
    return %arg0, %c0_i32, %c0_i32_0 : i32, i32, i32
  }
}

</mosaic_0001>

<bundles_post_ra>
// kernel: tpu_custom_call.1
= control target key start
LH: loop header
LB: loop body
LE: loop exit
PB: predicated region body
PF: predicated region fallthrough
CT: control target
= control target key end

     0   :  { %6 = vsyncpa [#allocation3], 0  ;;  %s843_s6 = smov [#allocation2]   ;;  %s1276_s0 = inlined_call_operand.hbm [shape: f32[2,8,8,8], index: 0, kind: input, shape index: {}]   ;;  %s1277_s1 = inlined_call_operand.vmem [shape: f32[2,3,8], index: 1, kind: output, shape index: {}]  }
   0x1   :  { %s12_s7 = sshll.u32 %s843_s6, 4  ;;  %s819_s10 = scalar_lea.hbm %s1276_s0, 2048  ;;  %s13_s7 = int_to_ptr.vmem [resolvable:$true] %s12_s7 }
   0x2   :  { %p820_p0 = scmp.ne.s32.totalorder %s1276_s0, %s819_s10  ;;  %p823_p1 = scmp.lt.u32.totalorder %s819_s10, %s1276_s0 }
   0x4   :  { %p825_p2 = pnand %p823_p1, %p820_p0 }
   0x6   :  { %828 = shalt.err (!%p825_p2)
}
   0x7   :  { %s829_s15 = scalar_lea.vmem %s13_s7, 2048  ;;  %p834_p4 = scmp.lt.s32.totalorder %s13_s7, %s13_s7 }
   0x8   :  { %p830_p3 = scmp.ne.s32.totalorder %s13_s7, %s829_s15  ;;  %p835_p5 = scmp.lt.s32.totalorder %s829_s15, %s829_s15 }
   0xa   :  { %p836_p6 = por %p835_p5, %p834_p4 }
   0xc   :  { %p837_p7 = pnand %p836_p6, %p830_p3 }
   0xe   :  { %840 = shalt.err (!%p837_p7)
}
   0xf   :  { %s844_s16 = smov 128   ;;  %s845_s17 = smov 8  }
  0x10   :  { %18 = dma.hbm_to_vmem [thread:$0]  %s1276_s0, 2048, %s13_s7, [#allocation3], %s844_s16, %s844_s16, %s845_s17  }
  0x11   :  { %841 = dma.done.wait [#allocation3], 2048  }
  0x12   :  { %842 = vsyncadd [#allocation3], 4294965248  ;;  %v29_v0 = vld [vmem:[#allocation2] sm:$0xff]  ;;  %v30_v1 = vld [vmem:[#allocation2 + $0x8] sm:$0xff]  ;;  %vm146_vm0 = vcmask 64512   ;;  %vm403_vm1 = vcmask 1041409  }
  0x13   :  { %v31_v2 = vld [vmem:[#allocation2 + $0x10] sm:$0xff]  ;;  %v32_v3 = vld [vmem:[#allocation2 + $0x18] sm:$0xff]  ;;  %v33_v4 = vld [vmem:[#allocation2 + $0x20] sm:$0xff]  ;;  %v45_v6 = vsub.f32 0.0, %v29_v0  ;;  %v46_v7 = vsub.f32 0.0, %v30_v1  ;;  %vm405_vm2 = vcmask 1042434  }
  0x14   :  { %v34_v5 = vld [vmem:[#allocation2 + $0x28] sm:$0xff]  ;;  %v47_v8 = vsub.f32 0.0, %v31_v2  ;;  %v35_v9 = vld [vmem:[#allocation2 + $0x30] sm:$0xff]  ;;  %v36_v10 = vld [vmem:[#allocation2 + $0x38] sm:$0xff]  ;;  %v48_v11 = vsub.f32 0.0, %v32_v3  ;;  %v49_v12 = vsub.f32 0.0, %v33_v4 }
  0x15   :  { %v50_v13 = vsub.f32 0.0, %v34_v5  ;;  %v51_v14 = vsub.f32 0.0, %v35_v9  ;;  %v61_v15 = vmul.f32 1.442695, %v45_v6  ;;  %v63_v16 = vmul.f32 1.442695, %v46_v7 }
  0x16   :  { %v37_v17 = vld [vmem:[#allocation2 + $0x40] sm:$0xff]  ;;  %v52_v18 = vsub.f32 0.0, %v36_v10  ;;  %v65_v19 = vmul.f32 1.442695, %v47_v8  ;;  %v67_v20 = vmul.f32 1.442695, %v48_v11 }
  0x17   :  { %751 = vpow2.f32 %v61_v15  ;;  %v69_v21 = vmul.f32 1.442695, %v49_v12  ;;  %v71_v22 = vmul.f32 1.442695, %v50_v13  ;;  %v38_v23 = vld [vmem:[#allocation2 + $0x48] sm:$0xff]  ;;  %v39_v24 = vld [vmem:[#allocation2 + $0x50] sm:$0xff] }
  0x18   :  { %753 = vpow2.f32 %v63_v16  ;;  %v40_v25 = vld [vmem:[#allocation2 + $0x58] sm:$0xff]  ;;  %v53_v26 = vsub.f32 0.0, %v37_v17  ;;  %v73_v27 = vmul.f32 1.442695, %v51_v14  ;;  %v41_v28 = vld [vmem:[#allocation2 + $0x60] sm:$0xff]  ;;  %v54_v29 = vsub.f32 0.0, %v38_v23 }
  0x19   :  { %755 = vpow2.f32 %v65_v19  ;;  %v55_v30 = vsub.f32 0.0, %v39_v24  ;;  %v75_v31 = vmul.f32 1.442695, %v52_v18  ;;  %v56_v32 = vsub.f32 0.0, %v40_v25  ;;  %v42_v40 = vld [vmem:[#allocation2 + $0x68] sm:$0xff]  ;;  %v43_v43 = vld [vmem:[#allocation2 + $0x70] sm:$0xff] }
  0x1a   :  { %757 = vpow2.f32 %v67_v20  ;;  %v57_v33 = vsub.f32 0.0, %v41_v28  ;;  %v77_v34 = vmul.f32 1.442695, %v53_v26  ;;  %v79_v35 = vmul.f32 1.442695, %v54_v29  ;;  %v44_v46 = vld [vmem:[#allocation2 + $0x78] sm:$0xff] }
  0x1b   :  { %759 = vpow2.f32 %v69_v21  ;;  %v81_v36 = vmul.f32 1.442695, %v55_v30  ;;  %v83_v37 = vmul.f32 1.442695, %v56_v32  ;;  %v58_v49 = vsub.f32 0.0, %v42_v40 }
  0x1c   :  { %761 = vpow2.f32 %v71_v22  ;;  %v85_v38 = vmul.f32 1.442695, %v57_v33  ;;  %v59_v52 = vsub.f32 0.0, %v43_v43  ;;  %v60_v55 = vsub.f32 0.0, %v44_v46 }
  0x1d   :  { %763 = vpow2.f32 %v73_v27  ;;  %v87_v60 = vmul.f32 1.442695, %v58_v49  ;;  %vm407_vm3 = vcmask 1043459   ;;  %vm409_vm4 = vcmask 1044484  }
  0x1e   :  { %765 = vpow2.f32 %v75_v31  ;;  %v89_v63 = vmul.f32 1.442695, %v59_v52  ;;  %v91_v1 = vmul.f32 1.442695, %v60_v55  ;;  %vm411_vm5 = vcmask 1045509  }
  0x1f   :  { %767 = vpow2.f32 %v77_v34  ;;  %vm413_vm6 = vcmask 1046534   ;;  %vm415_vm7 = vcmask 1047559   ;;  %vm26_vm8 = vcmask 59392  }
  0x20   :  { %769 = vpow2.f32 %v79_v35  ;;  %vm727_vm9 = vcmask 57344  }
  0x21   :  { %v752_v39 = vpop.eup %751  ;;  %771 = vpow2.f32 %v81_v36 }
  0x22   :  { %v754_v41 = vpop.eup %753  ;;  %v93_v42 = vadd.f32 1.0, %v752_v39  ;;  %773 = vpow2.f32 %v83_v37 }
  0x23   :  { %v756_v44 = vpop.eup %755  ;;  %v94_v45 = vadd.f32 1.0, %v754_v41  ;;  %775 = vpow2.f32 %v85_v38 }
  0x24   :  { %v758_v47 = vpop.eup %757  ;;  %v95_v48 = vadd.f32 1.0, %v756_v44  ;;  %777 = vrcp.f32 %v93_v42 }
  0x25   :  { %v760_v50 = vpop.eup %759  ;;  %v96_v51 = vadd.f32 1.0, %v758_v47  ;;  %779 = vrcp.f32 %v94_v45 }
  0x26   :  { %v762_v53 = vpop.eup %761  ;;  %v97_v54 = vadd.f32 1.0, %v760_v50  ;;  %781 = vrcp.f32 %v95_v48 }
  0x27   :  { %v764_v56 = vpop.eup %763  ;;  %v98_v57 = vadd.f32 1.0, %v762_v53  ;;  %783 = vrcp.f32 %v96_v51 }
  0x28   :  { %v766_v58 = vpop.eup %765  ;;  %v99_v59 = vadd.f32 1.0, %v764_v56  ;;  %785 = vrcp.f32 %v97_v54 }
  0x29   :  { %v768_v61 = vpop.eup %767  ;;  %v100_v62 = vadd.f32 1.0, %v766_v58  ;;  %787 = vrcp.f32 %v98_v57 }
  0x2a   :  { %v770_v0 = vpop.eup %769  ;;  %789 = vrcp.f32 %v99_v59  ;;  %v101_v3 = vadd.f32 1.0, %v768_v61 }
  0x2b   :  { %v772_v2 = vpop.eup %771  ;;  %791 = vrcp.f32 %v100_v62  ;;  %v102_v5 = vadd.f32 1.0, %v770_v0 }
  0x2c   :  { %v774_v4 = vpop.eup %773  ;;  %793 = vpow2.f32 %v87_v60  ;;  %v103_v7 = vadd.f32 1.0, %v772_v2 }
  0x2d   :  { %v776_v6 = vpop.eup %775  ;;  %795 = vpow2.f32 %v89_v63  ;;  %v104_v9 = vadd.f32 1.0, %v774_v4 }
  0x2e   :  { %v869_v8 = vpop.eup %777  ;;  %797 = vpow2.f32 %v91_v1  ;;  %v105_v12 = vadd.f32 1.0, %v776_v6 }
  0x2f   :  { %v871_v10 = vpop.eup %779  ;;  %v147_v11 = vsel %vm146_vm0, %v869_v8, 0.0  ;;  %799 = vrcp.f32 %v101_v3 }
  0x30   :  { %v875_v13 = vpop.eup %781  ;;  %v148_v14 = vrot.slane %v147_v11, 4  ;;  %v154_v15 = vsel %vm146_vm0, %v871_v10, 0.0  ;;  %801 = vrcp.f32 %v102_v5 }
  0x31   :  { %v879_v16 = vpop.eup %783  ;;  %v155_v17 = vrot.slane %v154_v15, 4  ;;  %v161_v18 = vsel %vm146_vm0, %v875_v13, 0.0  ;;  %803 = vrcp.f32 %v103_v7 }
  0x32   :  { %v883_v19 = vpop.eup %785  ;;  %v149_v20 = vadd.f32 %v148_v14, %v147_v11  ;;  %v162_v21 = vrot.slane %v161_v18, 4  ;;  %v168_v22 = vsel %vm146_vm0, %v879_v16, 0.0  ;;  %805 = vrcp.f32 %v104_v9 }
  0x33   :  { %v887_v23 = vpop.eup %787  ;;  %v156_v24 = vadd.f32 %v155_v17, %v154_v15  ;;  %v169_v25 = vrot.slane %v168_v22, 4  ;;  %v175_v26 = vsel %vm146_vm0, %v883_v19, 0.0  ;;  %807 = vrcp.f32 %v105_v12 }
  0x34   :  { %v891_v27 = vpop.eup %789  ;;  %v150_v28 = vrot.slane %v149_v20, 2  ;;  %v163_v29 = vadd.f32 %v162_v21, %v161_v18  ;;  %v176_v30 = vrot.slane %v175_v26, 4  ;;  %v182_v31 = vsel %vm146_vm0, %v887_v23, 0.0 }
  0x35   :  { %v895_v32 = vpop.eup %791  ;;  %v157_v33 = vrot.slane %v156_v24, 2  ;;  %v170_v34 = vadd.f32 %v169_v25, %v168_v22  ;;  %v183_v35 = vrot.slane %v182_v31, 4  ;;  %v189_v36 = vsel %vm146_vm0, %v891_v27, 0.0 }
  0x36   :  { %v794_v37 = vpop.eup %793  ;;  %v151_v38 = vadd.f32 %v150_v28, %v149_v20  ;;  %v164_v39 = vrot.slane %v163_v29, 2  ;;  %v177_v40 = vadd.f32 %v176_v30, %v175_v26  ;;  %v190_v41 = vrot.slane %v189_v36, 4 }
  0x37   :  { %v796_v42 = vpop.eup %795  ;;  %v158_v43 = vadd.f32 %v157_v33, %v156_v24  ;;  %v171_v44 = vrot.slane %v170_v34, 2  ;;  %v184_v45 = vadd.f32 %v183_v35, %v182_v31  ;;  %v196_v46 = vsel %vm146_vm0, %v895_v32, 0.0 }
  0x38   :  { %v798_v47 = vpop.eup %797  ;;  %v152_v48 = vrot.slane %v151_v38, 1  ;;  %v165_v49 = vadd.f32 %v164_v39, %v163_v29  ;;  %v178_v50 = vrot.slane %v177_v40, 2  ;;  %v191_v51 = vadd.f32 %v190_v41, %v189_v36 }
  0x39   :  { %v901_v52 = vpop.eup %799  ;;  %v159_v53 = vrot.slane %v158_v43, 1  ;;  %v172_v54 = vadd.f32 %v171_v44, %v170_v34  ;;  %v185_v55 = vrot.slane %v184_v45, 2  ;;  %v197_v56 = vrot.slane %v196_v46, 4 }
  0x3a   :  { %v903_v57 = vpop.eup %801  ;;  %v905_v58 = vadd.f32 %v152_v48, %v151_v38  ;;  %v166_v59 = vrot.slane %v165_v49, 1  ;;  %v179_v60 = vadd.f32 %v178_v50, %v177_v40  ;;  %v192_v61 = vrot.slane %v191_v51, 2 }
  0x3b   :  { %v907_v62 = vpop.eup %803  ;;  %v909_v63 = vadd.f32 %v159_v53, %v158_v43  ;;  %v173_v0 = vrot.slane %v172_v54, 1  ;;  %v186_v1 = vadd.f32 %v185_v55, %v184_v45  ;;  %v198_v2 = vadd.f32 %v197_v56, %v196_v46 }
  0x3c   :  { %v911_v3 = vpop.eup %805  ;;  %v913_v4 = vadd.f32 %v166_v59, %v165_v49  ;;  %v180_v5 = vrot.slane %v179_v60, 1  ;;  %v193_v6 = vadd.f32 %v192_v61, %v191_v51  ;;  %v106_v7 = vadd.f32 1.0, %v794_v37 }
  0x3d   :  { %v915_v9 = vpop.eup %807  ;;  %v917_v11 = vadd.f32 %v173_v0, %v172_v54  ;;  %v187_v12 = vrot.slane %v186_v1, 1  ;;  %v199_v14 = vrot.slane %v198_v2, 2  ;;  %v404_v15 = vsel %vm403_vm1, %v909_v63, %v905_v58 }
  0x3e   :  { %v922_v17 = vadd.f32 %v180_v5, %v179_v60  ;;  %v194_v18 = vrot.slane %v193_v6, 1  ;;  %v406_v20 = vsel %vm405_vm2, %v913_v4, %v404_v15  ;;  %v107_v21 = vadd.f32 1.0, %v796_v42 }
  0x3f   :  { %v926_v22 = vadd.f32 %v187_v12, %v186_v1  ;;  %v200_v24 = vadd.f32 %v199_v14, %v198_v2  ;;  %v408_v25 = vsel %vm407_vm3, %v917_v11, %v406_v20  ;;  %v108_v26 = vadd.f32 1.0, %v798_v47 }
  0x40   :  { %v930_v28 = vadd.f32 %v194_v18, %v193_v6  ;;  %v410_v29 = vsel %vm409_vm4, %v922_v17, %v408_v25  ;;  %809 = vrcp.f32 %v106_v7  ;;  %v203_v30 = vsel %vm146_vm0, %v901_v52, 0.0 }
  0x41   :  { %v201_v31 = vrot.slane %v200_v24, 1  ;;  %v412_v33 = vsel %vm411_vm5, %v926_v22, %v410_v29  ;;  %811 = vrcp.f32 %v107_v21  ;;  %v204_v34 = vrot.slane %v203_v30, 4 }
  0x42   :  { %v414_v35 = vsel %vm413_vm6, %v930_v28, %v412_v33  ;;  %813 = vrcp.f32 %v108_v26  ;;  %v210_v36 = vsel %vm146_vm0, %v903_v57, 0.0  ;;  %v217_v37 = vsel %vm146_vm0, %v907_v62, 0.0 }
  0x43   :  { %v944_v38 = vadd.f32 %v201_v31, %v200_v24  ;;  %v205_v39 = vadd.f32 %v204_v34, %v203_v30  ;;  %v211_v40 = vrot.slane %v210_v36, 4  ;;  %v218_v41 = vrot.slane %v217_v37, 4 }
  0x44   :  { %v224_v42 = vsel %vm146_vm0, %v911_v3, 0.0  ;;  %v231_v43 = vsel %vm146_vm0, %v915_v9, 0.0 }
  0x45   :  { %v416_v44 = vsel %vm415_vm7, %v944_v38, %v414_v35  ;;  %v206_v45 = vrot.slane %v205_v39, 2  ;;  %v212_v46 = vadd.f32 %v211_v40, %v210_v36  ;;  %v219_v47 = vadd.f32 %v218_v41, %v217_v37 }
  0x46   :  { %v426_v48 = vsel %vm146_vm0, %v416_v44, 0.0  ;;  %v225_v49 = vrot.slane %v224_v42, 4  ;;  %v232_v50 = vrot.slane %v231_v43, 4 }
  0x47   :  { %427 = vadd.xlane.f32.xlu0 %v426_v48  ;;  %v207_v51 = vadd.f32 %v206_v45, %v205_v39  ;;  %v213_v53 = vrot.slane %v212_v46, 2  ;;  %v220_v54 = vrot.slane %v219_v47, 2 }
  0x48   :  { %v226_v55 = vadd.f32 %v225_v49, %v224_v42  ;;  %v233_v56 = vadd.f32 %v232_v50, %v231_v43 }
  0x49   :  { %v208_v59 = vrot.slane %v207_v51, 1  ;;  %v214_v60 = vadd.f32 %v213_v53, %v212_v46  ;;  %v221_v61 = vadd.f32 %v220_v54, %v219_v47 }
  0x4a   :  { %v953_v0 = vpop.eup %809  ;;  %v227_v1 = vrot.slane %v226_v55, 2  ;;  %v234_v2 = vrot.slane %v233_v56, 2 }
  0x4b   :  { %v955_v5 = vpop.eup %811  ;;  %v957_v6 = vadd.f32 %v208_v59, %v207_v51  ;;  %v215_v7 = vrot.slane %v214_v60, 1  ;;  %v222_v12 = vrot.slane %v221_v61, 1  ;;  %v238_v14 = vsel %vm146_vm0, %v953_v0, 0.0 }
  0x4c   :  { %v961_v15 = vpop.eup %813  ;;  %v228_v18 = vadd.f32 %v227_v1, %v226_v55  ;;  %v235_v20 = vadd.f32 %v234_v2, %v233_v56  ;;  %v239_v21 = vrot.slane %v238_v14, 4  ;;  %v245_v24 = vsel %vm146_vm0, %v955_v5, 0.0 }
  0x4d   :  { %v965_v25 = vadd.f32 %v215_v7, %v214_v60  ;;  %v967_v26 = vadd.f32 %v222_v12, %v221_v61  ;;  %v246_v29 = vrot.slane %v245_v24, 4  ;;  %v252_v30 = vsel %vm146_vm0, %v961_v15, 0.0 }
  0x4e   :  { %v229_v31 = vrot.slane %v228_v18, 1  ;;  %v236_v33 = vrot.slane %v235_v20, 1  ;;  %v240_v34 = vadd.f32 %v239_v21, %v238_v14  ;;  %v253_v35 = vrot.slane %v252_v30, 4 }
  0x4f   :  { %v247_v36 = vadd.f32 %v246_v29, %v245_v24  ;;  %v417_v37 = vsel %vm403_vm1, %v965_v25, %v957_v6  ;;  %v846_v7 = vmov 0.0   ;;  %v1278_v12 = vlaneseq }
  0x50   :  { %v974_v39 = vadd.f32 %v229_v31, %v228_v18  ;;  %v241_v40 = vrot.slane %v240_v34, 2  ;;  %v254_v41 = vadd.f32 %v253_v35, %v252_v30  ;;  %v976_v42 = vadd.f32 %v236_v33, %v235_v20  ;;  %27 = vst.msk [vmem:[%s1277_s1] sm:$0x7] %vm26_vm8, %v846_v7  ;;  %28 = vst.msk [vmem:[%s1277_s1 + $0x4] sm:$0x7] %vm26_vm8, %v846_v7 }
  0x51   :  { %v248_v43 = vrot.slane %v247_v36, 2  ;;  %v418_v44 = vsel %vm405_vm2, %v967_v26, %v417_v37  ;;  %v142_v14 = vshrl.u32 %v1278_v12, 7 }
  0x52   :  { %v242_v45 = vadd.f32 %v241_v40, %v240_v34  ;;  %v255_v46 = vrot.slane %v254_v41, 2  ;;  %v419_v47 = vsel %vm407_vm3, %v974_v39, %v418_v44 }
  0x53   :  { %v249_v48 = vadd.f32 %v248_v43, %v247_v36  ;;  %v420_v53 = vsel %vm409_vm4, %v976_v42, %v419_v47  ;;  %v143_v18 = vcvt.s32.f32 %v142_v14 }
  0x54   :  { %v243_v49 = vrot.slane %v242_v45, 1  ;;  %v256_v50 = vadd.f32 %v255_v46, %v254_v41 }
  0x55   :  { %v250_v51 = vrot.slane %v249_v48, 1  ;;  %v144_v20 = vadd.f32 0.5, %v143_v18 }
  0x56   :  { %v984_v54 = vadd.f32 %v243_v49, %v242_v45  ;;  %v257_v55 = vrot.slane %v256_v50, 1 }
  0x57   :  { %v986_v56 = vadd.f32 %v250_v51, %v249_v48  ;;  %v1004_v21 = vmul.f32 0.125, %v144_v20 }
  0x58   :  { %1282 = vst [vmem:[#allocation5_spill] sm:$0xff] %v984_v54  ;;  %v988_v59 = vadd.f32 %v257_v55, %v256_v50  ;;  %v421_v60 = vsel %vm411_vm5, %v984_v54, %v420_v53 }
  0x59   :  { %1283 = vst [vmem:[#allocation6_spill] sm:$0xff] %v986_v56  ;;  %v422_v61 = vsel %vm413_vm6, %v986_v56, %v421_v60  ;;  %v259_v24 = vmul.f32 %v869_v8, %v1004_v21  ;;  %v260_v29 = vmul.f32 %v871_v10, %v1004_v21  ;;  %v261_v30 = vmul.f32 %v875_v13, %v1004_v21 }
  0x5a   :  { %1284 = vst [vmem:[#allocation7_spill] sm:$0xff] %v988_v59  ;;  %v423_v1 = vsel %vm415_vm7, %v988_v59, %v422_v61  ;;  %v262_v34 = vmul.f32 %v879_v16, %v1004_v21  ;;  %v263_v35 = vmul.f32 %v883_v19, %v1004_v21  ;;  %v264_v36 = vmul.f32 %v887_v23, %v1004_v21 }
  0x5b   :  { %v429_v2 = vsel %vm146_vm0, %v423_v1, 0.0  ;;  %v275_v31 = vsel %vm146_vm0, %v259_v24, 0.0  ;;  %v282_v33 = vsel %vm146_vm0, %v260_v29, 0.0  ;;  %v265_v8 = vmul.f32 %v891_v27, %v1004_v21 }
  0x5c   :  { %430 = vadd.xlane.f32.xlu0 %v429_v2  ;;  %v276_v10 = vrot.slane %v275_v31, 4  ;;  %v289_v37 = vsel %vm146_vm0, %v261_v30, 0.0  ;;  %v266_v13 = vmul.f32 %v895_v32, %v1004_v21  ;;  %v267_v40 = vmul.f32 %v901_v52, %v1004_v21 }
  0x5d   :  { %v268_v16 = vmul.f32 %v903_v57, %v1004_v21  ;;  %v283_v41 = vrot.slane %v282_v33, 4  ;;  %v269_v19 = vmul.f32 %v907_v62, %v1004_v21  ;;  %v270_v23 = vmul.f32 %v911_v3, %v1004_v21 }
  0x5e   :  { %v271_v27 = vmul.f32 %v915_v9, %v1004_v21  ;;  %v290_v43 = vrot.slane %v289_v37, 4  ;;  %v296_v44 = vsel %vm146_vm0, %v262_v34, 0.0  ;;  %v303_v32 = vsel %vm146_vm0, %v263_v35, 0.0 }
  0x5f   :  { %v272_v52 = vmul.f32 %v953_v0, %v1004_v21  ;;  %v277_v45 = vadd.f32 %v276_v10, %v275_v31  ;;  %v310_v57 = vsel %vm146_vm0, %v264_v36, 0.0  ;;  %v317_v46 = vsel %vm146_vm0, %v265_v8, 0.0 }
  0x60   :  { %v284_v62 = vadd.f32 %v283_v41, %v282_v33  ;;  %v324_v47 = vsel %vm146_vm0, %v266_v13, 0.0  ;;  %v331_v3 = vsel %vm146_vm0, %v267_v40, 0.0  ;;  %v338_v9 = vsel %vm146_vm0, %v268_v16, 0.0 }
  0x61   :  { %v297_v48 = vrot.slane %v296_v44, 4  ;;  %v304_v49 = vrot.slane %v303_v32, 4  ;;  %v345_v50 = vsel %vm146_vm0, %v269_v19, 0.0  ;;  %v352_v51 = vsel %vm146_vm0, %v270_v23, 0.0 }
  0x62   :  { %v273_v0 = vmul.f32 %v955_v5, %v1004_v21  ;;  %v311_v53 = vrot.slane %v310_v57, 4  ;;  %v318_v55 = vrot.slane %v317_v46, 4  ;;  %v359_v60 = vsel %vm146_vm0, %v271_v27, 0.0 }
  0x63   :  { %v274_v61 = vmul.f32 %v961_v15, %v1004_v21  ;;  %v325_v1 = vrot.slane %v324_v47, 4  ;;  %v332_v2 = vrot.slane %v331_v3, 4  ;;  %v339_v7 = vrot.slane %v338_v9, 4 }
  0x64   :  { %v278_v14 = vrot.slane %v277_v45, 2  ;;  %v291_v18 = vadd.f32 %v290_v43, %v289_v37  ;;  %v346_v20 = vrot.slane %v345_v50, 4  ;;  %v353_v24 = vrot.slane %v352_v51, 4 }
  0x65   :  { %v285_v29 = vrot.slane %v284_v62, 2  ;;  %v298_v30 = vadd.f32 %v297_v48, %v296_v44  ;;  %v305_v31 = vadd.f32 %v304_v49, %v303_v32  ;;  %v360_v33 = vrot.slane %v359_v60, 4 }
  0x66   :  { %v312_v34 = vadd.f32 %v311_v53, %v310_v57  ;;  %v319_v5 = vadd.f32 %v318_v55, %v317_v46  ;;  %v366_v35 = vsel %vm146_vm0, %v272_v52, 0.0  ;;  %v373_v36 = vsel %vm146_vm0, %v273_v0, 0.0 }
  0x67   :  { %v326_v8 = vadd.f32 %v325_v1, %v324_v47  ;;  %v333_v10 = vadd.f32 %v332_v2, %v331_v3  ;;  %v340_v15 = vadd.f32 %v339_v7, %v338_v9  ;;  %v380_v13 = vsel %vm146_vm0, %v274_v61, 0.0 }
  0x68   :  { %v279_v40 = vadd.f32 %v278_v14, %v277_v45  ;;  %v292_v16 = vrot.slane %v291_v18, 2  ;;  %v347_v37 = vadd.f32 %v346_v20, %v345_v50  ;;  %v354_v41 = vadd.f32 %v353_v24, %v352_v51 }
  0x69   :  { %v286_v19 = vadd.f32 %v285_v29, %v284_v62  ;;  %v361_v23 = vadd.f32 %v360_v33, %v359_v60  ;;  %v367_v27 = vrot.slane %v366_v35, 4  ;;  %v374_v43 = vrot.slane %v373_v36, 4 }
  0x6a   :  { %v299_v44 = vrot.slane %v298_v30, 2  ;;  %v306_v32 = vrot.slane %v305_v31, 2  ;;  %v313_v57 = vrot.slane %v312_v34, 2  ;;  %v381_v46 = vrot.slane %v380_v13, 4 }
  0x6b   :  { %v320_v52 = vrot.slane %v319_v5, 2  ;;  %v327_v48 = vrot.slane %v326_v8, 2  ;;  %v334_v49 = vrot.slane %v333_v10, 2  ;;  %v341_v47 = vrot.slane %v340_v15, 2 }
  0x6c   :  { %v280_v3 = vrot.slane %v279_v40, 1  ;;  %v293_v9 = vadd.f32 %v292_v16, %v291_v18  ;;  %v348_v0 = vrot.slane %v347_v37, 2  ;;  %v355_v53 = vrot.slane %v354_v41, 2 }
  0x6d   :  { %v287_v45 = vrot.slane %v286_v19, 1  ;;  %v362_v55 = vrot.slane %v361_v23, 2  ;;  %v368_v50 = vadd.f32 %v367_v27, %v366_v35  ;;  %v375_v51 = vadd.f32 %v374_v43, %v373_v36 }
  0x6e   :  { %v300_v62 = vadd.f32 %v299_v44, %v298_v30  ;;  %v307_v60 = vadd.f32 %v306_v32, %v305_v31  ;;  %v314_v61 = vadd.f32 %v313_v57, %v312_v34  ;;  %v382_v1 = vadd.f32 %v381_v46, %v380_v13 }
  0x6f   :  { %v321_v7 = vadd.f32 %v320_v52, %v319_v5  ;;  %v328_v14 = vadd.f32 %v327_v48, %v326_v8  ;;  %v335_v20 = vadd.f32 %v334_v49, %v333_v10  ;;  %v342_v24 = vadd.f32 %v341_v47, %v340_v15 }
  0x70   :  { %v294_v29 = vrot.slane %v293_v9, 1  ;;  %v349_v33 = vadd.f32 %v348_v0, %v347_v37  ;;  %v356_v12 = vadd.f32 %v355_v53, %v354_v41  ;;  %v281_v18 = vadd.f32 %v280_v3, %v279_v40 }
  0x71   :  { %v363_v16 = vadd.f32 %v362_v55, %v361_v23  ;;  %v369_v59 = vrot.slane %v368_v50, 2  ;;  %v376_v56 = vrot.slane %v375_v51, 2  ;;  %v301_v54 = vrot.slane %v300_v62, 1 }
  0x72   :  { %v308_v35 = vrot.slane %v307_v60, 1  ;;  %v315_v36 = vrot.slane %v314_v61, 1  ;;  %v383_v30 = vrot.slane %v382_v1, 2  ;;  %v322_v31 = vrot.slane %v321_v7, 1 }
  0x73   :  { %v329_v34 = vrot.slane %v328_v14, 1  ;;  %v336_v13 = vrot.slane %v335_v20, 1  ;;  %v343_v27 = vrot.slane %v342_v24, 1  ;;  %v288_v5 = vadd.f32 %v287_v45, %v286_v19 }
  0x74   :  { %v295_v8 = vadd.f32 %v294_v29, %v293_v9  ;;  %v350_v10 = vrot.slane %v349_v33, 1  ;;  %v357_v15 = vrot.slane %v356_v12, 1  ;;  %v364_v43 = vrot.slane %v363_v16, 1 }
  0x75   :  { %v1054_v37 = vadd.f32 %v369_v59, %v368_v50  ;;  %v1056_v41 = vadd.f32 %v376_v56, %v375_v51  ;;  %v1285_v40 = vlaneseq  ;;  %v302_v44 = vadd.f32 %v301_v54, %v300_v62 }
  0x76   :  { %v309_v32 = vadd.f32 %v308_v35, %v307_v60  ;;  %v316_v57 = vadd.f32 %v315_v36, %v314_v61  ;;  %v1061_v46 = vadd.f32 %v383_v30, %v382_v1  ;;  %v323_v52 = vadd.f32 %v322_v31, %v321_v7 }
  0x77   :  { %v1059_v23 = vand.u32 127, %v1285_v40  ;;  %v330_v48 = vadd.f32 %v329_v34, %v328_v14  ;;  %v1063_v49 = vadd.f32 %v336_v13, %v335_v20  ;;  %v1065_v19 = vadd.f32 %v343_v27, %v342_v24 }
  0x78   :  { %v1067_v47 = vadd.f32 %v350_v10, %v349_v33  ;;  %v1069_v59 = vadd.f32 %v357_v15, %v356_v12  ;;  %v570_v56 = vrot.slane %v1004_v21, 1  ;;  %v571_v3 = vrot.slane %v1004_v21, 2 }
  0x79   :  { %v1073_v9 = vadd.f32 %v364_v43, %v363_v16  ;;  %v371_v54 = vrot.slane %v1054_v37, 1  ;;  %v378_v0 = vrot.slane %v1056_v41, 1  ;;  %v572_v50 = vrot.slane %v1004_v21, 3 }
  0x7a   :  { %v573_v12 = vrot.slane %v1004_v21, 4  ;;  %v574_v51 = vrot.slane %v1004_v21, 5  ;;  %v575_v20 = vrot.slane %v1004_v21, 6  ;;  %v576_v16 = vrot.slane %v1004_v21, 7 }
  0xd4   :  { %v428_v2 = vpop.xlane.xlu0 %427 }
  0xd5   :  { %815 = vrcp.f32 %v428_v2 }
  0xdf   :  { %v816_v45 = vpop.eup %815 }
  0xe0   :  { %v436_v62 = vrot.slane %v816_v45, 1  ;;  %v437_v60 = vrot.slane %v816_v45, 2  ;;  %v438_v61 = vrot.slane %v816_v45, 3  ;;  %v439_v1 = vrot.slane %v816_v45, 4 }
  0xe1   :  { %v440_v2 = vrot.slane %v816_v45, 5  ;;  %v441_v7 = vrot.slane %v816_v45, 6  ;;  %v442_v14 = vrot.slane %v816_v45, 7  ;;  %v466_v24 = vmul.f32 %v816_v45, %v905_v58 }
  0xe2   :  { %v467_v29 = vmul.f32 %v436_v62, %v909_v63  ;;  %v468_v33 = vmul.f32 %v437_v60, %v913_v4  ;;  %v469_v35 = vmul.f32 %v438_v61, %v917_v11  ;;  %v1089_v36 = vmul.f32 %v439_v1, %v922_v17 }
  0xe3   :  { %v1092_v30 = vmul.f32 %v440_v2, %v926_v22  ;;  %v1095_v31 = vmul.f32 %v441_v7, %v930_v28  ;;  %v483_v34 = vmul.f32 %v436_v62, %v288_v5  ;;  %v484_v13 = vmul.f32 %v437_v60, %v295_v8 }
  0xe4   :  { %v485_v58 = vmul.f32 %v438_v61, %v302_v44  ;;  %v486_v27 = vmul.f32 %v439_v1, %v309_v32  ;;  %v1098_v63 = vmul.f32 %v442_v14, %v944_v38  ;;  %v482_v4 = vmul.f32 %v816_v45, %v281_v18 }
  0xe5   :  { %v487_v10 = vmul.f32 %v440_v2, %v316_v57  ;;  %v488_v15 = vmul.f32 %v441_v7, %v323_v52  ;;  %v489_v11 = vmul.f32 %v442_v14, %v330_v48  ;;  %v525_v43 = vrot.slane %v483_v34, 7 }
  0xe6   :  { %v527_v17 = vrot.slane %v484_v13, 6  ;;  %v585_v40 = vmul.f32 %v466_v24, %v1004_v21  ;;  %v529_v22 = vrot.slane %v485_v58, 5  ;;  %v531_v53 = vrot.slane %v486_v27, 4 }
  0xe7   :  { %v533_v55 = vrot.slane %v487_v10, 3  ;;  %v586_v28 = vmul.f32 %v570_v56, %v467_v29  ;;  %v526_v5 = vsel %vm403_vm1, %v525_v43, %v482_v4  ;;  %v587_v38 = vmul.f32 %v571_v3, %v468_v33 }
  0xe8   :  { %v588_v18 = vmul.f32 %v572_v50, %v469_v35  ;;  %v589_v8 = vmul.f32 %v573_v12, %v1089_v36  ;;  %v528_v32 = vsel %vm405_vm2, %v527_v17, %v526_v5  ;;  %v590_v57 = vmul.f32 %v574_v51, %v1092_v30 }
  0xe9   :  { %v431_v44 = vpop.xlane.xlu0 %430  ;;  %v591_v52 = vmul.f32 %v575_v20, %v1095_v31  ;;  %v592_v48 = vmul.f32 %v576_v16, %v1098_v63  ;;  %v530_v45 = vsel %vm407_vm3, %v529_v22, %v528_v32  ;;  %v617_v62 = vrot.slane %v586_v28, 7 }
  0xea   :  { %817 = vrcp.f32 %v431_v44  ;;  %v619_v60 = vrot.slane %v587_v38, 6  ;;  %v532_v61 = vsel %vm409_vm4, %v531_v53, %v530_v45  ;;  %v535_v1 = vrot.slane %v488_v15, 2 }
  0xeb   :  { %v537_v2 = vrot.slane %v489_v11, 1  ;;  %v621_v7 = vrot.slane %v588_v18, 5  ;;  %v534_v14 = vsel %vm411_vm5, %v533_v55, %v532_v61  ;;  %v618_v34 = vsel %vm403_vm1, %v617_v62, %v585_v40 }
  0xec   :  { %v623_v13 = vrot.slane %v589_v8, 4  ;;  %v625_v58 = vrot.slane %v590_v57, 3  ;;  %v536_v27 = vsel %vm413_vm6, %v535_v1, %v534_v14  ;;  %v620_v4 = vsel %vm405_vm2, %v619_v60, %v618_v34 }
  0xed   :  { %v677_v10 = vrot.slane %v467_v29, 7  ;;  %v679_v43 = vrot.slane %v468_v33, 6  ;;  %v538_v17 = vsel %vm415_vm7, %v537_v2, %v536_v27  ;;  %v622_v22 = vsel %vm407_vm3, %v621_v7, %v620_v4 }
  0xee   :  { %v627_v53 = vrot.slane %v591_v52, 2  ;;  %v629_v15 = vrot.slane %v592_v48, 1  ;;  %v555_v11 = vsel %vm146_vm0, %v538_v17, 0.0  ;;  %v624_v55 = vsel %vm409_vm4, %v623_v13, %v622_v22  ;;  %v1289_v22 = vld [vmem:[#allocation7_spill] sm:$0xff] }
  0xef   :  { %v678_v40 = vsel %vm403_vm1, %v677_v10, %v466_v24  ;;  %v681_v28 = vrot.slane %v469_v35, 5  ;;  %v556_v5 = vrot.slane %v555_v11, 4  ;;  %v626_v38 = vsel %vm411_vm5, %v625_v58, %v624_v55 }
  0xf0   :  { %v680_v18 = vsel %vm405_vm2, %v679_v43, %v678_v40  ;;  %v683_v29 = vrot.slane %v1089_v36, 4  ;;  %v372_v33 = vadd.f32 %v371_v54, %v1054_v37  ;;  %v628_v8 = vsel %vm413_vm6, %v627_v53, %v626_v38  ;;  %v1288_v43 = vld [vmem:[#allocation6_spill] sm:$0xff] }
  0xf1   :  { %v682_v44 = vsel %vm407_vm3, %v681_v28, %v680_v18  ;;  %v685_v32 = vrot.slane %v1092_v30, 3  ;;  %v557_v57 = vadd.f32 %v556_v5, %v555_v11  ;;  %v630_v24 = vsel %vm415_vm7, %v629_v15, %v628_v8 }
  0xf2   :  { %v684_v35 = vsel %vm409_vm4, %v683_v29, %v682_v44  ;;  %v687_v52 = vrot.slane %v1095_v31, 2  ;;  %v379_v36 = vadd.f32 %v378_v0, %v1056_v41  ;;  %v1286_v37 = vrot.slane %v1061_v46, 1 }
  0xf3   :  { %v647_v48 = vsel %vm146_vm0, %v630_v24, 0.0  ;;  %v686_v45 = vsel %vm411_vm5, %v685_v32, %v684_v35  ;;  %v558_v62 = vrot.slane %v557_v57, 2  ;;  %v689_v1 = vrot.slane %v1098_v63, 1  ;;  %v1287_v63 = vld [vmem:[#allocation5_spill] sm:$0xff] }
  0xf4   :  { %v386_v54 = vadd.f32 %v1286_v37, %v1061_v46  ;;  %v818_v30 = vpop.eup %817  ;;  %v648_v60 = vrot.slane %v647_v48, 4  ;;  %v688_v61 = vsel %vm413_vm6, %v687_v52, %v686_v45 }
  0xf5   :  { %v443_v31 = vrot.slane %v818_v30, 1  ;;  %v444_v2 = vrot.slane %v818_v30, 2  ;;  %v445_v7 = vrot.slane %v818_v30, 3  ;;  %v446_v14 = vrot.slane %v818_v30, 4 }
  0xf6   :  { %v447_v41 = vrot.slane %v818_v30, 5  ;;  %v448_v0 = vrot.slane %v818_v30, 6  ;;  %v449_v34 = vrot.slane %v818_v30, 7  ;;  %v474_v46 = vmul.f32 %v818_v30, %v957_v6 }
  0xf7   :  { %v475_v13 = vmul.f32 %v443_v31, %v965_v25  ;;  %v1157_v58 = vmul.f32 %v444_v2, %v967_v26  ;;  %v1160_v27 = vmul.f32 %v445_v7, %v974_v39  ;;  %v1163_v4 = vmul.f32 %v446_v14, %v976_v42 }
  0xf8   :  { %v1166_v10 = vmul.f32 %v447_v41, %v1287_v63  ;;  %v1169_v17 = vmul.f32 %v448_v0, %v1288_v43  ;;  %v1172_v53 = vmul.f32 %v449_v34, %v1289_v22  ;;  %v490_v6 = vmul.f32 %v818_v30, %v1063_v49 }
  0xf9   :  { %v491_v25 = vmul.f32 %v443_v31, %v1065_v19  ;;  %v492_v26 = vmul.f32 %v444_v2, %v1067_v47  ;;  %v493_v39 = vmul.f32 %v445_v7, %v1069_v59  ;;  %v494_v42 = vmul.f32 %v446_v14, %v1073_v9 }
  0xfa   :  { %v495_v15 = vmul.f32 %v447_v41, %v372_v33  ;;  %v496_v11 = vmul.f32 %v448_v0, %v379_v36  ;;  %v497_v55 = vmul.f32 %v449_v34, %v386_v54  ;;  %v559_v40 = vadd.f32 %v558_v62, %v557_v57 }
  0xfb   :  { %v539_v28 = vrot.slane %v491_v25, 7  ;;  %v541_v5 = vrot.slane %v492_v26, 6  ;;  %v543_v38 = vrot.slane %v493_v39, 5  ;;  %v545_v18 = vrot.slane %v494_v42, 4 }
  0xfc   :  { %v547_v29 = vrot.slane %v495_v15, 3  ;;  %v549_v8 = vrot.slane %v496_v11, 2  ;;  %v551_v44 = vrot.slane %v497_v55, 1  ;;  %v560_v49 = vrot.slane %v559_v40, 1  ;;  %v723_v11 = vld [vmem:[%s1277_s1] sm:$0x1] }
  0xfd   :  { %v540_v19 = vsel %vm403_vm1, %v539_v28, %v490_v6  ;;  %v593_v47 = vmul.f32 %v474_v46, %v1004_v21  ;;  %v594_v59 = vmul.f32 %v570_v56, %v475_v13  ;;  %v595_v9 = vmul.f32 %v571_v3, %v1157_v58 }
  0xfe   :  { %v542_v33 = vsel %vm405_vm2, %v541_v5, %v540_v19  ;;  %v561_v32 = vadd.f32 %v560_v49, %v559_v40  ;;  %v596_v57 = vmul.f32 %v572_v50, %v1160_v27  ;;  %v597_v24 = vmul.f32 %v573_v12, %v1163_v4 }
  0xff   :  { %v544_v35 = vsel %vm407_vm3, %v543_v38, %v542_v33  ;;  %v598_v56 = vmul.f32 %v574_v51, %v1166_v10  ;;  %v599_v3 = vmul.f32 %v575_v20, %v1169_v17  ;;  %v600_v52 = vmul.f32 %v576_v16, %v1172_v53 }
 0x100   :  { %v546_v50 = vsel %vm409_vm4, %v545_v18, %v544_v35  ;;  %v631_v36 = vrot.slane %v594_v59, 7  ;;  %v633_v37 = vrot.slane %v595_v9, 6  ;;  %v635_v54 = vrot.slane %v596_v57, 5 }
 0x101   :  { %v548_v12 = vsel %vm411_vm5, %v547_v29, %v546_v50  ;;  %v637_v45 = vrot.slane %v597_v24, 4  ;;  %v639_v30 = vrot.slane %v598_v56, 3  ;;  %v641_v62 = vrot.slane %v599_v3, 2  ;;  %v724_v24 = vld [vmem:[%s1277_s1 + $0x4] sm:$0x1] }
 0x102   :  { %v550_v51 = vsel %vm413_vm6, %v549_v8, %v548_v12  ;;  %v632_v31 = vsel %vm403_vm1, %v631_v36, %v593_v47  ;;  %v643_v2 = vrot.slane %v600_v52, 1  ;;  %v649_v20 = vadd.f32 %v648_v60, %v647_v48 }
 0x103   :  { %v552_v21 = vsel %vm415_vm7, %v551_v44, %v550_v51  ;;  %v634_v16 = vsel %vm405_vm2, %v633_v37, %v632_v31  ;;  %v690_v7 = vsel %vm415_vm7, %v689_v1, %v688_v61  ;;  %v691_v14 = vrot.slane %v475_v13, 7 }
 0x104   :  { %v562_v41 = vsel %vm146_vm0, %v552_v21, 0.0  ;;  %v636_v0 = vsel %vm407_vm3, %v635_v54, %v634_v16  ;;  %v650_v34 = vrot.slane %v649_v20, 2  ;;  %v693_v63 = vrot.slane %v1157_v58, 6  ;;  %v736_v21 = vld [vmem:[%s1277_s1 + $0x2] sm:$0x1] }
 0x105   :  { %v563_v43 = vrot.slane %v562_v41, 4  ;;  %v638_v22 = vsel %vm409_vm4, %v637_v45, %v636_v0  ;;  %v692_v48 = vsel %vm403_vm1, %v691_v14, %v474_v46  ;;  %v695_v60 = vrot.slane %v1160_v27, 5  ;;  %v737_v14 = vld [vmem:[%s1277_s1 + $0x6] sm:$0x1] }
 0x106   :  { %v640_v6 = vsel %vm411_vm5, %v639_v30, %v638_v22  ;;  %v651_v25 = vadd.f32 %v650_v34, %v649_v20  ;;  %v694_v61 = vsel %vm405_vm2, %v693_v63, %v692_v48  ;;  %v697_v1 = vrot.slane %v1163_v4, 4 }
 0x107   :  { %v564_v13 = vadd.f32 %v563_v43, %v562_v41  ;;  %v642_v26 = vsel %vm413_vm6, %v641_v62, %v640_v6  ;;  %v696_v39 = vsel %vm407_vm3, %v695_v60, %v694_v61  ;;  %v699_v58 = vrot.slane %v1166_v10, 3  ;;  %v730_v10 = vld [vmem:[%s1277_s1 + $0x1] sm:$0x1] }
 0x108   :  { %v644_v42 = vsel %vm415_vm7, %v643_v2, %v642_v26  ;;  %v652_v15 = vrot.slane %v651_v25, 1  ;;  %v698_v46 = vsel %vm409_vm4, %v697_v1, %v696_v39  ;;  %v701_v27 = vrot.slane %v1169_v17, 2 }
 0x109   :  { %v565_v55 = vrot.slane %v564_v13, 2  ;;  %v654_v4 = vsel %vm146_vm0, %v644_v42, 0.0  ;;  %v700_v40 = vsel %vm411_vm5, %v699_v58, %v698_v46  ;;  %v703_v28 = vrot.slane %v1172_v53, 1 }
 0x10a   :  { %v653_v5 = vadd.f32 %v652_v15, %v651_v25  ;;  %v655_v38 = vrot.slane %v654_v4, 4  ;;  %v702_v18 = vsel %vm413_vm6, %v701_v27, %v700_v40  ;;  %v707_v17 = vsel %vm146_vm0, %v690_v7, 0.0 }
 0x10b   :  { %v566_v29 = vadd.f32 %v565_v55, %v564_v13  ;;  %v704_v8 = vsel %vm415_vm7, %v703_v28, %v702_v18  ;;  %v708_v44 = vrot.slane %v707_v17, 4  ;;  %v725_v49 = vadd.f32 %v723_v11, %v561_v32 }
 0x10c   :  { %v656_v19 = vadd.f32 %v655_v38, %v654_v4  ;;  %v714_v47 = vsel %vm146_vm0, %v704_v8, 0.0  ;;  %v732_v59 = vadd.f32 %v730_v10, %v653_v5  ;;  %v1290_v32 = vcvt.s32.f32 %v1059_v23  ;;  %v731_v23 = vld [vmem:[%s1277_s1 + $0x5] sm:$0x1] }
 0x10d   :  { %v567_v53 = vrot.slane %v566_v29, 1  ;;  %v709_v9 = vadd.f32 %v708_v44, %v707_v17  ;;  %v715_v33 = vrot.slane %v714_v47, 4  ;;  %728 = vst.msk [vmem:[%s1277_s1] sm:$0x1] %vm727_vm9, %v725_v49 }
 0x10e   :  { %v657_v57 = vrot.slane %v656_v19, 2  ;;  %734 = vst.msk [vmem:[%s1277_s1 + $0x1] sm:$0x1] %vm727_vm9, %v732_v59  ;;  %v507_v35 = vadd.f32 0.5, %v1290_v32 }
 0x10f   :  { %v568_v56 = vadd.f32 %v567_v53, %v566_v29  ;;  %v710_v3 = vrot.slane %v709_v9, 2  ;;  %v716_v52 = vadd.f32 %v715_v33, %v714_v47 }
 0x110   :  { %v658_v50 = vadd.f32 %v657_v57, %v656_v19  ;;  %v508_v45 = vmul.f32 0.125, %v507_v35 }
 0x111   :  { %v711_v36 = vadd.f32 %v710_v3, %v709_v9  ;;  %v717_v37 = vrot.slane %v716_v52, 2  ;;  %v726_v54 = vadd.f32 %v724_v24, %v568_v56 }
 0x112   :  { %v659_v12 = vrot.slane %v658_v50, 1 }
 0x113   :  { %v712_v30 = vrot.slane %v711_v36, 1  ;;  %v718_v62 = vadd.f32 %v717_v37, %v716_v52  ;;  %729 = vst.msk [vmem:[%s1277_s1 + $0x4] sm:$0x1] %vm727_vm9, %v726_v54 }
 0x114   :  { %v660_v51 = vadd.f32 %v659_v12, %v658_v50 }
 0x115   :  { %v713_v31 = vadd.f32 %v712_v30, %v711_v36  ;;  %v719_v2 = vrot.slane %v718_v62, 1 }
 0x116   :  { %v733_v20 = vadd.f32 %v731_v23, %v660_v51 }
 0x117   :  { %v720_v16 = vadd.f32 %v719_v2, %v718_v62  ;;  %v721_v7 = vmul.f32 %v713_v31, %v508_v45 }
 0x118   :  { %735 = vst.msk [vmem:[%s1277_s1 + $0x5] sm:$0x1] %vm727_vm9, %v733_v20 }
 0x119   :  { %v722_v41 = vmul.f32 %v720_v16, %v508_v45  ;;  %v738_v0 = vadd.f32 %v736_v21, %v721_v7 }
 0x11b   :  { %v739_v34 = vadd.f32 %v737_v14, %v722_v41  ;;  %740 = vst.msk [vmem:[%s1277_s1 + $0x2] sm:$0x1] %vm727_vm9, %v738_v0 }
 0x11d   :  { %741 = vst.msk [vmem:[%s1277_s1 + $0x6] sm:$0x1] %vm727_vm9, %v739_v34 }
 0x11e   :  { %746 = vsyncpa [#allocation3], 1 }

</bundles_post_ra>
